<compile_context>
chip_gen: v5e
topology: v5e:2x2
jax: 0.10.0
libtpu: 0.0.40
codegen_flags: <defaults>
</compile_context>

<pallas_src>
import functools

import jax
import jax.numpy as jnp
from jax.experimental import pallas as pl
from jax.experimental.pallas import tpu as pltpu


def _dma_copy_kernel(x_hbm, o_hbm, sems, *, n_chunks, chunk_rows):
    """Direct HBM->HBM copy: start n_chunks DMAs, then wait on all of them.

    Chunking (static Python loop, static slices) lets several DMAs be in
    flight at once; for small arrays n_chunks == 1 and this is a single
    whole-array DMA.
    """
    for c in range(n_chunks):
        sl = pl.ds(c * chunk_rows, chunk_rows)
        pltpu.make_async_copy(x_hbm.at[sl], o_hbm.at[sl], sems.at[c]).start()
    for c in range(n_chunks):
        sl = pl.ds(c * chunk_rows, chunk_rows)
        pltpu.make_async_copy(x_hbm.at[sl], o_hbm.at[sl], sems.at[c]).wait()


_LANE_CANDIDATES = (8192, 4096, 2048, 1024, 512, 256, 128)
_MIN_CHUNK_BYTES = 1 << 20   # only split the copy if every chunk is >= 1 MiB
_MIN_PALLAS_BYTES = 1 << 20  # below this, launch overhead dwarfs the copy


def _pallas_identity_copy(x):
    """HBM->HBM DMA copy of x via a Pallas kernel (benchmark artifact)."""
    orig_shape = x.shape
    total = int(x.size)
    nbytes = total * jnp.dtype(x.dtype).itemsize

    # Lane-dense 2-D view when the element count allows it (gives a clean
    # leading dim to chunk over); otherwise keep the original shape and do a
    # single whole-array DMA -- HBM->HBM copies have no (8,128) block rule.
    lane = next((l for l in _LANE_CANDIDATES if total % l == 0), None)
    if lane is not None:
        rows = total // lane
        x2d = x.reshape(rows, lane)
    else:
        x2d = x if x.ndim >= 1 else x.reshape(1)
        rows = x2d.shape[0]

    # Pick a chunk count that evenly divides the leading dim and keeps each
    # DMA reasonably large (avoid many tiny descriptors).
    n_chunks = 1
    for cand in (8, 4, 2):
        if rows % cand == 0 and nbytes // cand >= _MIN_CHUNK_BYTES:
            n_chunks = cand
            break
    chunk_rows = rows // n_chunks

    kernel = functools.partial(
        _dma_copy_kernel, n_chunks=n_chunks, chunk_rows=chunk_rows
    )
    out = pl.pallas_call(
        kernel,
        out_shape=jax.ShapeDtypeStruct(x2d.shape, x2d.dtype),
        in_specs=[pl.BlockSpec(memory_space=pl.ANY)],
        out_specs=pl.BlockSpec(memory_space=pl.ANY),
        scratch_shapes=[pltpu.SemaphoreType.DMA((n_chunks,))],
    )(x2d)
    return out.reshape(orig_shape)


def identity_projection(x, *, use_pallas: bool = False,
                        min_pallas_bytes: int = _MIN_PALLAS_BYTES):
    """Pallas equivalent of IdentityProjection.forward(x): returns x.

    Default is the true zero-copy identity (return x, zero HBM traffic).
    Set use_pallas=True to route the data through an explicit HBM->HBM DMA
    copy kernel; inputs smaller than `min_pallas_bytes` still short-circuit
    to the zero-copy path unless that threshold is lowered.
    """
    if not use_pallas:
        return x
    if x.ndim == 0 or x.size == 0:
        return x
    nbytes = int(x.size) * jnp.dtype(x.dtype).itemsize
    if nbytes < min_pallas_bytes:
        return x
    return _pallas_identity_copy(x)


class IdentityProjection:
    """Minimal JAX mirror of the PyTorch IdentityProjection module."""

    def __init__(self, input_dims, use_pallas: bool = False):
        self._input_dims = input_dims  # no parameters to initialize
        self._use_pallas = use_pallas

    @property
    def proj_dims(self):
        return self._input_dims

    def __call__(self, x):
        return identity_projection(x, use_pallas=self._use_pallas)


if __name__ == "__main__":
    key = jax.random.PRNGKey(0)
    k1, k2, k3 = jax.random.split(key, 3)

    # Small shape consistent with the module (batch, channels, spatial, spatial).
    x = jax.random.normal(k1, (2, 4, 16, 16), dtype=jnp.float32)
    proj = IdentityProjection(input_dims=4)

    # Default path: true zero-copy identity.
    y = proj(x)
    jax.block_until_ready(y)
    assert y.shape == x.shape and y.dtype == x.dtype
    assert jnp.array_equal(y, x)
    assert proj.proj_dims == 4

    # Explicitly exercise the Pallas HBM->HBM DMA kernel on the small input
    # (forced past the tiny-input shortcut): lane-dense reshape, 1 chunk.
    y_k = identity_projection(x, use_pallas=True, min_pallas_bytes=0)
    jax.block_until_ready(y_k)
    assert y_k.shape == x.shape and y_k.dtype == x.dtype
    assert jnp.array_equal(y_k, x)

    # Odd-sized (not a multiple of 128) bf16 input: single whole-array DMA,
    # no VMEM tiling constraints involved.
    x_odd = jax.random.normal(k2, (7, 13), dtype=jnp.bfloat16)
    y_odd = identity_projection(x_odd, use_pallas=True, min_pallas_bytes=0)
    jax.block_until_ready(y_odd)
    assert y_odd.shape == x_odd.shape and y_odd.dtype == x_odd.dtype
    assert jnp.array_equal(y_odd, x_odd)

    # Larger f32 input (2 MiB) that exceeds the 1 MiB threshold and exercises
    # the chunked-DMA path (2 concurrent DMAs of 1 MiB each).
    x_big = jax.random.normal(k3, (512, 1024), dtype=jnp.float32)
    y_big = identity_projection(x_big, use_pallas=True)
    jax.block_until_ready(y_big)
    assert y_big.shape == x_big.shape and y_big.dtype == x_big.dtype
    assert jnp.array_equal(y_big, x_big)

    print("KERNEL_OK")
</pallas_src>

<mosaic_0001>
module attributes {stable_mosaic.version = 11 : i64} {
  func.func @_dma_copy_kernel(%arg0: memref<1x2048xf32, #tpu.memory_space<any>>, %arg1: memref<1x2048xf32, #tpu.memory_space<any>>, %arg2: memref<1x!tpu.dma_semaphore, #tpu.memory_space<semaphore_mem>>) attributes {dimension_semantics = [], scalar_prefetch = 0 : i64, scratch_operands = 1 : i64, tpu.core_type = #tpu.core_type<tc>} {
    %c0_i32 = arith.constant 0 : i32
    %c0_i32_0 = arith.constant 0 : i32
    %c0_i32_1 = arith.constant 0 : i32
    %0 = tpu.memref_slice %arg0[%c0_i32_0, %c0_i32_1] : memref<1x2048xf32, #tpu.memory_space<any>> -> memref<1x2048xf32, #tpu.memory_space<any>>
    %c0_i32_2 = arith.constant 0 : i32
    %c0_i32_3 = arith.constant 0 : i32
    %1 = tpu.memref_slice %arg1[%c0_i32_2, %c0_i32_3] : memref<1x2048xf32, #tpu.memory_space<any>> -> memref<1x2048xf32, #tpu.memory_space<any>>
    %2 = tpu.memref_slice %arg2[%c0_i32] : memref<1x!tpu.dma_semaphore, #tpu.memory_space<semaphore_mem>> -> memref<1x!tpu.dma_semaphore, #tpu.memory_space<semaphore_mem>>
    %3 = tpu.memref_squeeze %2 : memref<1x!tpu.dma_semaphore, #tpu.memory_space<semaphore_mem>> -> memref<!tpu.dma_semaphore, #tpu.memory_space<semaphore_mem>>
    tpu.enqueue_dma source(%0 : memref<1x2048xf32, #tpu.memory_space<any>>) target(%1 : memref<1x2048xf32, #tpu.memory_space<any>>) target_semaphore(%3 : memref<!tpu.dma_semaphore, #tpu.memory_space<semaphore_mem>>)
    %c0_i32_4 = arith.constant 0 : i32
    %c0_i32_5 = arith.constant 0 : i32
    %c0_i32_6 = arith.constant 0 : i32
    %4 = tpu.memref_slice %arg0[%c0_i32_5, %c0_i32_6] : memref<1x2048xf32, #tpu.memory_space<any>> -> memref<1x2048xf32, #tpu.memory_space<any>>
    %c0_i32_7 = arith.constant 0 : i32
    %c0_i32_8 = arith.constant 0 : i32
    %5 = tpu.memref_slice %arg1[%c0_i32_7, %c0_i32_8] : memref<1x2048xf32, #tpu.memory_space<any>> -> memref<1x2048xf32, #tpu.memory_space<any>>
    %6 = tpu.memref_slice %arg2[%c0_i32_4] : memref<1x!tpu.dma_semaphore, #tpu.memory_space<semaphore_mem>> -> memref<1x!tpu.dma_semaphore, #tpu.memory_space<semaphore_mem>>
    %7 = tpu.memref_squeeze %6 : memref<1x!tpu.dma_semaphore, #tpu.memory_space<semaphore_mem>> -> memref<!tpu.dma_semaphore, #tpu.memory_space<semaphore_mem>>
    tpu.wait_dma2 semaphore(%7 : memref<!tpu.dma_semaphore, #tpu.memory_space<semaphore_mem>>) src(%4 : memref<1x2048xf32, #tpu.memory_space<any>>) dst(%5 : memref<1x2048xf32, #tpu.memory_space<any>>)
    return
  }
}

</mosaic_0001>

<bundles_post_ra>
// kernel: tpu_custom_call.1
= control target key start
LH: loop header
LB: loop body
LE: loop exit
PB: predicated region body
PF: predicated region fallthrough
CT: control target
= control target key end

     0   :  { %s32_s12 = smov [#allocation2]   ;;  %s33_s13 = smov [#allocation3]   ;;  %s51_s0 = inlined_call_operand.hbm [shape: f32[1,2048], index: 0, kind: input, shape index: {}]   ;;  %s52_s1 = inlined_call_operand.hbm [shape: f32[1,2048], index: 1, kind: output, shape index: {}]  }
   0x1   :  { %s10_s8 = sshll.u32 %s51_s0, 4  ;;  %s12_s11 = sshll.u32 %s52_s1, 4  ;;  %s11_s8 = int_to_ptr.hbm [resolvable:$true] %s10_s8  ;;  %s13_s11 = int_to_ptr.hbm [resolvable:$true] %s12_s11 }
   0x2   :  { %s34_s14 = smov 0  }
   0x3   :  { %16 = dma.general %s11_s8, 256, %s13_s11, %s32_s12, %s33_s13, [#allocation4], %s34_s14, 0  }
   0x4   :  { %30 = dma.done.wait [#allocation2], 256 }
   0x5   :  { %31 = vsyncadd [#allocation2], 4294967040 }
   0x6   :  { %20 = vsyncmov [#allocation2] }
   0x9   :  { %s21_s15 = vpop.sfrf %20 }
   0xa   :  { %p26_p0 = scmp.ne.s32.totalorder %s21_s15, 0 }
   0xc   :  { %25 = shalt.err (%p26_p0)  }

</bundles_post_ra>
